<compile_context>
chip_gen: v6e
topology: v6e:2x2x1
jax: 0.10.0
libtpu: 0.0.40
codegen_flags: <defaults>
</compile_context>

<pallas_src>
import jax
import jax.numpy as jnp
from jax.experimental import pallas as pl
from jax.experimental.pallas import tpu as pltpu

_LANES = 128


def _row_granularity(itemsize):
    # Sublane packing granularity: f32 -> 8 rows/vreg, bf16 -> 16, int8 -> 32.
    return {4: 8, 2: 16, 1: 32}.get(int(itemsize), 8)


def _default_num_cores():
    # v7x has 2 TensorCores per chip; v5e / v6e (and CPU interpret) have 1.
    try:
        kind = jax.devices()[0].device_kind.lower()
    except Exception:
        return 1
    return 2 if ("v7" in kind or "tpu7" in kind) else 1


def _loss_mean_ref(y_true, y_pred, w_mse, w_mae):
    d = y_true.astype(jnp.float32) - y_pred.astype(jnp.float32)
    return w_mse * jnp.mean(d * d) + w_mae * jnp.mean(jnp.abs(d))


def _make_loss_mean_kernel(w_mse_n, w_mae_n, tile_rows, chunk_rows, steps,
                           valid_rows, needs_mask):
    """Builds the kernel body.  Every parameter here is a *Python* scalar, so
    nothing is captured as a traced constant (the previous trace error)."""
    num_chunks = tile_rows // chunk_rows

    def kernel(yt_ref, yp_ref, out_ref, acc_sq_ref, acc_ab_ref):
        c = pl.program_id(0)   # TensorCore-parallel axis
        i = pl.program_id(1)   # sequential reduction axis

        # Zero the vector accumulators at the start of each core's reduction.
        @pl.when(i == 0)
        def _():
            acc_sq_ref[...] = jnp.zeros_like(acc_sq_ref)
            acc_ab_ref[...] = jnp.zeros_like(acc_ab_ref)

        block_row0 = (c * steps + i) * tile_rows

        def chunk_body(g, carry):
            r0 = pl.multiple_of(g * chunk_rows, chunk_rows)
            d = (yt_ref[pl.ds(r0, chunk_rows), :].astype(jnp.float32) -
                 yp_ref[pl.ds(r0, chunk_rows), :].astype(jnp.float32))
            if needs_mask:
                # Zero rows past the true row count (edge / ghost blocks read
                # unspecified padding; the select makes them contribute 0).
                row_ids = jax.lax.broadcasted_iota(
                    jnp.int32, (chunk_rows, _LANES), 0)
                valid = (block_row0 + r0 + row_ids) < valid_rows
                d = jnp.where(valid, d, 0.0)
            sq = (d * d).reshape(chunk_rows // 8, 8, _LANES)
            ab = jnp.abs(d).reshape(chunk_rows // 8, 8, _LANES)
            # Leading-axis sums lower to plain vreg adds (pure VPU).
            acc_sq_ref[...] += jnp.sum(sq, axis=0)
            acc_ab_ref[...] += jnp.sum(ab, axis=0)
            return carry

        jax.lax.fori_loop(0, num_chunks, chunk_body, 0, unroll=True)

        # Finalize once per core: sublane reduce + weighted combine.
        @pl.when(i == steps - 1)
        def _():
            sse_lane = jnp.sum(acc_sq_ref[...], axis=0, keepdims=True)  # (1,128)
            sae_lane = jnp.sum(acc_ab_ref[...], axis=0, keepdims=True)  # (1,128)
            combined = w_mse_n * sse_lane + w_mae_n * sae_lane
            out_ref[...] = combined.reshape(out_ref.shape)

    return kernel


def loss_mean(y_true, y_pred, raw_weights=(1.0, 2.0), tile_rows=2048,
              num_cores=None):
    """Weighted mean of [MSELoss, L1Loss], matching LossMean.forward.
    Always returns float32 (torch would return the input dtype)."""
    assert y_true.shape == y_pred.shape

    # Normalize weights exactly like LossMean.__init__.
    wsum = float(sum(raw_weights))
    w_mse = float(raw_weights[0]) / wsum
    w_mae = float(raw_weights[1]) / wsum

    n = int(y_true.size)
    itemsize = int(jnp.dtype(y_true.dtype).itemsize)
    sub = _row_granularity(itemsize)

    # Tiny inputs: kernel launch / tiling granularity doesn't pay off.
    if n < sub * _LANES:
        return _loss_mean_ref(y_true, y_pred, w_mse, w_mae)

    if num_cores is None:
        num_cores = _default_num_cores()
    num_cores = max(1, int(num_cores))

    yt_flat = y_true.reshape(-1)
    yp_flat = y_pred.reshape(-1)

    if n % _LANES == 0:
        rows = n // _LANES
        yt2 = yt_flat.reshape(rows, _LANES)   # free bitcast reshape, no copy
        yp2 = yp_flat.reshape(rows, _LANES)
    else:
        # Rare fallback: pad only to the next multiple of 128 (one copy pass).
        # Zero padding is exact for SSE/SAE; 1/N below uses the true N.
        rows = int(pl.cdiv(n, _LANES))
        pad = rows * _LANES - n
        yt2 = jnp.pad(yt_flat, (0, pad)).reshape(rows, _LANES)
        yp2 = jnp.pad(yp_flat, (0, pad)).reshape(rows, _LANES)

    # ---- tile geometry --------------------------------------------------
    # ~1 MiB per input block regardless of dtype; clamp for small inputs.
    tile = int(tile_rows) * max(1, 4 // itemsize)
    per_core = int(pl.cdiv(rows, num_cores))
    tile = min(tile, per_core, rows)
    if tile >= 256:
        tile = (tile // 256) * 256
    else:
        tile = max(sub, (tile // sub) * sub)
    chunk = min(256, tile)

    total_blocks = int(pl.cdiv(rows, tile))
    num_cores = max(1, min(num_cores, total_blocks))
    steps = int(pl.cdiv(total_blocks, num_cores))
    needs_mask = (num_cores * steps * tile != rows)
    last_block = total_blocks - 1

    kernel = _make_loss_mean_kernel(
        w_mse_n=w_mse / n, w_mae_n=w_mae / n,
        tile_rows=tile, chunk_rows=chunk, steps=steps,
        valid_rows=rows, needs_mask=needs_mask)

    def in_index_map(c, i):
        # Clamp so "ghost" blocks past the end re-read the last valid block;
        # their contribution is masked to zero inside the kernel.
        b = c * steps + i
        return (jnp.minimum(b, last_block), 0)

    cost = pl.CostEstimate(
        flops=5 * n, transcendentals=0,
        bytes_accessed=2 * n * itemsize + num_cores * _LANES * 4)

    partials = pl.pallas_call(
        kernel,
        # Lane-dense (1, 1, 128) output block per core (no lane-sparse store).
        out_shape=jax.ShapeDtypeStruct((num_cores, 1, _LANES), jnp.float32),
        grid_spec=pltpu.PrefetchScalarGridSpec(
            num_scalar_prefetch=0,
            grid=(num_cores, steps),
            in_specs=[
                pl.BlockSpec((tile, _LANES), in_index_map),
                pl.BlockSpec((tile, _LANES), in_index_map),
            ],
            out_specs=pl.BlockSpec((1, 1, _LANES), lambda c, i: (c, 0, 0)),
            scratch_shapes=[
                pltpu.VMEM((8, _LANES), jnp.float32),  # SSE accumulator
                pltpu.VMEM((8, _LANES), jnp.float32),  # SAE accumulator
            ],
        ),
        compiler_params=pltpu.CompilerParams(
            # Leading axis shards across TensorCores on v7x; on 1-TC chips it
            # has size 1.  Reduction axis is sequential per core.
            dimension_semantics=("parallel", "arbitrary"),
        ),
        cost_estimate=cost,
    )(yt2, yp2)

    # Final tiny reduction (num_cores x 128 partials) done outside the kernel.
    return jnp.sum(partials)


if __name__ == "__main__":
    key = jax.random.PRNGKey(0)
    k1, k2 = jax.random.split(key)

    # Small NCHW shapes consistent with a segmentation/regression loss input.
    B, C, H, W = 2, 4, 16, 16
    y_true = jax.random.normal(k1, (B, C, H, W), dtype=jnp.float32)
    y_pred = jax.random.normal(k2, (B, C, H, W), dtype=jnp.float32)

    loss = loss_mean(y_true, y_pred, raw_weights=(1.0, 2.0))
    loss = jax.block_until_ready(loss)

    # Pure-JAX reference of the same forward semantics.
    ref = _loss_mean_ref(y_true, y_pred, 1.0 / 3.0, 2.0 / 3.0)
    assert jnp.allclose(loss, ref, rtol=1e-5, atol=1e-5), (loss, ref)

    print("KERNEL_OK")
</pallas_src>

<mosaic_0001>
module attributes {stable_mosaic.version = 11 : i64} {
  func.func @kernel(%arg0: i32, %arg1: i32, %arg2: memref<16x128xf32, #tpu.memory_space<vmem>>, %arg3: memref<16x128xf32, #tpu.memory_space<vmem>>, %arg4: memref<1x1x128xf32, #tpu.memory_space<vmem>>, %arg5: memref<8x128xf32, #tpu.memory_space<vmem>>, %arg6: memref<8x128xf32, #tpu.memory_space<vmem>>) attributes {dimension_semantics = [#tpu.dimension_semantics<parallel>, #tpu.dimension_semantics<arbitrary>], iteration_bounds = array<i64: 1, 1>, scalar_prefetch = 0 : i64, scratch_operands = 2 : i64, tpu.core_type = #tpu.core_type<tc>, window_params = [{transform_indices = @transform_0, window_bounds = array<i64: 16, 128>}, {transform_indices = @transform_1, window_bounds = array<i64: 16, 128>}, {transform_indices = @transform_2, window_bounds = array<i64: 1, 1, 128>}]} {
    %c0_i32 = arith.constant 0 : i32
    %0 = arith.cmpi eq, %arg1, %c0_i32 : i32
    %1 = arith.extui %0 : i1 to i32
    %c0_i32_0 = arith.constant 0 : i32
    %2 = arith.cmpi ne, %1, %c0_i32_0 : i32
    scf.if %2 {
      %cst_14 = arith.constant 0.000000e+00 : f32
      %25 = vector.broadcast %cst_14 : f32 to vector<8x128xf32>
      %c0_15 = arith.constant 0 : index
      %c0_16 = arith.constant 0 : index
      %26 = vector.load %arg5[%c0_15, %c0_16] : memref<8x128xf32, #tpu.memory_space<vmem>>, vector<8x128xf32>
      tpu.vector_store %arg5[%c0_15, %c0_16], %25 {strides = array<i32>} : memref<8x128xf32, #tpu.memory_space<vmem>>, vector<8x128xf32>,
      %cst_17 = arith.constant 0.000000e+00 : f32
      %27 = vector.broadcast %cst_17 : f32 to vector<8x128xf32>
      %c0_18 = arith.constant 0 : index
      %c0_19 = arith.constant 0 : index
      %28 = vector.load %arg6[%c0_18, %c0_19] : memref<8x128xf32, #tpu.memory_space<vmem>>, vector<8x128xf32>
      tpu.vector_store %arg6[%c0_18, %c0_19], %27 {strides = array<i32>} : memref<8x128xf32, #tpu.memory_space<vmem>>, vector<8x128xf32>,
    } else {
    }
    %c0_i32_1 = arith.constant 0 : i32
    %c16_i32 = arith.constant 16 : i32
    %3 = arith.muli %c0_i32_1, %c16_i32 : i32
    %4 = tpu.assume_multiple %3, 16 : i32
    %5 = arith.index_cast %4 : i32 to index
    %c0 = arith.constant 0 : index
    %6 = vector.load %arg2[%5, %c0] : memref<16x128xf32, #tpu.memory_space<vmem>>, vector<16x128xf32>
    %7 = arith.index_cast %4 : i32 to index
    %c0_2 = arith.constant 0 : index
    %8 = vector.load %arg3[%7, %c0_2] : memref<16x128xf32, #tpu.memory_space<vmem>>, vector<16x128xf32>
    %9 = arith.subf %6, %8 : vector<16x128xf32>
    %10 = arith.mulf %9, %9 : vector<16x128xf32>
    %11 = vector.shape_cast %10 : vector<16x128xf32> to vector<2x8x128xf32>
    %12 = math.absf %9 : vector<16x128xf32>
    %13 = vector.shape_cast %12 : vector<16x128xf32> to vector<2x8x128xf32>
    %c0_3 = arith.constant 0 : index
    %c0_4 = arith.constant 0 : index
    %14 = vector.load %arg5[%c0_3, %c0_4] : memref<8x128xf32, #tpu.memory_space<vmem>>, vector<8x128xf32>
    %cst = arith.constant dense<0.000000e+00> : vector<8x128xf32>
    %15 = vector.multi_reduction <add>, %11, %cst [0] : vector<2x8x128xf32> to vector<8x128xf32>
    %16 = arith.addf %14, %15 : vector<8x128xf32>
    %c0_5 = arith.constant 0 : index
    %c0_6 = arith.constant 0 : index
    %17 = vector.load %arg5[%c0_5, %c0_6] : memref<8x128xf32, #tpu.memory_space<vmem>>, vector<8x128xf32>
    tpu.vector_store %arg5[%c0_5, %c0_6], %16 {strides = array<i32>} : memref<8x128xf32, #tpu.memory_space<vmem>>, vector<8x128xf32>,
    %c0_7 = arith.constant 0 : index
    %c0_8 = arith.constant 0 : index
    %18 = vector.load %arg6[%c0_7, %c0_8] : memref<8x128xf32, #tpu.memory_space<vmem>>, vector<8x128xf32>
    %cst_9 = arith.constant dense<0.000000e+00> : vector<8x128xf32>
    %19 = vector.multi_reduction <add>, %13, %cst_9 [0] : vector<2x8x128xf32> to vector<8x128xf32>
    %20 = arith.addf %18, %19 : vector<8x128xf32>
    %c0_10 = arith.constant 0 : index
    %c0_11 = arith.constant 0 : index
    %21 = vector.load %arg6[%c0_10, %c0_11] : memref<8x128xf32, #tpu.memory_space<vmem>>, vector<8x128xf32>
    tpu.vector_store %arg6[%c0_10, %c0_11], %20 {strides = array<i32>} : memref<8x128xf32, #tpu.memory_space<vmem>>, vector<8x128xf32>,
    %c1_i32 = arith.constant 1 : i32
    %c0_i32_12 = arith.constant 0 : i32
    %22 = arith.cmpi eq, %arg1, %c0_i32_12 : i32
    %23 = arith.extui %22 : i1 to i32
    %c0_i32_13 = arith.constant 0 : i32
    %24 = arith.cmpi ne, %23, %c0_i32_13 : i32
    scf.if %24 {
      %c0_14 = arith.constant 0 : index
      %c0_15 = arith.constant 0 : index
      %25 = vector.load %arg5[%c0_14, %c0_15] : memref<8x128xf32, #tpu.memory_space<vmem>>, vector<8x128xf32>
      %cst_16 = arith.constant dense<0.000000e+00> : vector<128xf32>
      %26 = vector.multi_reduction <add>, %25, %cst_16 [0] : vector<8x128xf32> to vector<128xf32>
      %27 = vector.shape_cast %26 : vector<128xf32> to vector<1x128xf32>
      %c0_17 = arith.constant 0 : index
      %c0_18 = arith.constant 0 : index
      %28 = vector.load %arg6[%c0_17, %c0_18] : memref<8x128xf32, #tpu.memory_space<vmem>>, vector<8x128xf32>
      %cst_19 = arith.constant dense<0.000000e+00> : vector<128xf32>
      %29 = vector.multi_reduction <add>, %28, %cst_19 [0] : vector<8x128xf32> to vector<128xf32>
      %30 = vector.shape_cast %29 : vector<128xf32> to vector<1x128xf32>
      %cst_20 = arith.constant 1.62760422E-4 : f32
      %31 = vector.broadcast %cst_20 : f32 to vector<1x128xf32>
      %32 = arith.mulf %31, %27 : vector<1x128xf32>
      %cst_21 = arith.constant 3.25520843E-4 : f32
      %33 = vector.broadcast %cst_21 : f32 to vector<1x128xf32>
      %34 = arith.mulf %33, %30 : vector<1x128xf32>
      %35 = arith.addf %32, %34 : vector<1x128xf32>
      %36 = vector.shape_cast %35 : vector<1x128xf32> to vector<1x1x128xf32>
      %c0_22 = arith.constant 0 : index
      %c0_23 = arith.constant 0 : index
      %c0_24 = arith.constant 0 : index
      %37 = vector.load %arg4[%c0_22, %c0_23, %c0_24] : memref<1x1x128xf32, #tpu.memory_space<vmem>>, vector<1x1x128xf32>
      tpu.vector_store %arg4[%c0_22, %c0_23, %c0_24], %36 {strides = array<i32>} : memref<1x1x128xf32, #tpu.memory_space<vmem>>, vector<1x1x128xf32>,
    } else {
    }
    return
  }
  func.func @transform_0(%arg0: i32, %arg1: i32) -> (i32, i32) {
    %c1_i32 = arith.constant 1 : i32
    %0 = arith.muli %arg0, %c1_i32 : i32
    %1 = arith.addi %0, %arg1 : i32
    %c0_i32 = arith.constant 0 : i32
    %2 = arith.minsi %1, %c0_i32 : i32
    %c0_i32_0 = arith.constant 0 : i32
    %c0_i32_1 = arith.constant 0 : i32
    return %2, %c0_i32_0 : i32, i32
  }
  func.func @transform_1(%arg0: i32, %arg1: i32) -> (i32, i32) {
    %c1_i32 = arith.constant 1 : i32
    %0 = arith.muli %arg0, %c1_i32 : i32
    %1 = arith.addi %0, %arg1 : i32
    %c0_i32 = arith.constant 0 : i32
    %2 = arith.minsi %1, %c0_i32 : i32
    %c0_i32_0 = arith.constant 0 : i32
    %c0_i32_1 = arith.constant 0 : i32
    return %2, %c0_i32_0 : i32, i32
  }
  func.func @transform_2(%arg0: i32, %arg1: i32) -> (i32, i32, i32) {
    %c0_i32 = arith.constant 0 : i32
    %c0_i32_0 = arith.constant 0 : i32
    %c0_i32_1 = arith.constant 0 : i32
    return %arg0, %c0_i32, %c0_i32_0 : i32, i32, i32
  }
}

</mosaic_0001>

<bundles_post_ra>
// kernel: tpu_custom_call.1
= control target key start
LH: loop header
LB: loop body
LE: loop exit
PB: predicated region body
PF: predicated region fallthrough
CT: control target
= control target key end

     0   :  { %7 = vsyncpa [#allocation5], 0  ;;  %s225_s0 = inlined_call_operand.hbm [shape: f32[16,128], index: 0, kind: input, shape index: {}]   ;;  %s226_s1 = inlined_call_operand.hbm [shape: f32[16,128], index: 1, kind: input, shape index: {}]   ;;  %s227_s2 = inlined_call_operand.hbm [shape: f32[1,1,128], index: 2, kind: output, shape index: {}]  }
   0x1   :  { %8 = vsyncpa [#allocation8], 0 }
   0x2   :  { %9 = vsyncpa [#allocation6], 0  ;;  %s196_s9 = smov [#allocation4]  }
   0x3   :  { %s21_s10 = sshll.u32 %s196_s9, 4  ;;  %s22_s10 = int_to_ptr.vmem [resolvable:$true] %s21_s10 }
   0x4   :  { %s138_s11 = scalar_lea.vmem %s22_s10, 256  ;;  %p143_p1 = scmp.lt.s32.totalorder %s22_s10, %s22_s10 }
   0x5   :  { %p139_p0 = scmp.ne.s32.totalorder %s22_s10, %s138_s11  ;;  %p144_p2 = scmp.lt.s32.totalorder %s138_s11, %s138_s11 }
   0x7   :  { %p145_p3 = por %p144_p2, %p143_p1 }
   0x9   :  { %p146_p4 = pnand %p145_p3, %p139_p0 }
   0xb   :  { %149 = shalt.err (!%p146_p4)
}
   0xc   :  { %s197_s12 = smov 128   ;;  %s198_s13 = smov 8  }
   0xd   :  { %27 = dma.hbm_to_vmem [thread:$0]  %s225_s0, 256, %s22_s10, [#allocation5], %s197_s12, %s197_s12, %s198_s13  }
   0xe   :  { %s199_s16 = smov [#allocation7]  }
   0xf   :  { %s39_s17 = sshll.u32 %s199_s16, 4  ;;  %s40_s17 = int_to_ptr.vmem [resolvable:$true] %s39_s17 }
  0x10   :  { %s158_s18 = scalar_lea.vmem %s40_s17, 256  ;;  %p163_p6 = scmp.lt.s32.totalorder %s40_s17, %s40_s17 }
  0x11   :  { %p159_p5 = scmp.ne.s32.totalorder %s40_s17, %s158_s18  ;;  %p164_p7 = scmp.lt.s32.totalorder %s158_s18, %s158_s18 }
  0x13   :  { %p165_p8 = por %p164_p7, %p163_p6 }
  0x15   :  { %p166_p9 = pnand %p165_p8, %p159_p5 }
  0x17   :  { %169 = shalt.err (!%p166_p9)
}
  0x18   :  { %45 = dma.hbm_to_vmem [thread:$0]  %s226_s1, 256, %s40_s17, [#allocation8], %s197_s12, %s197_s12, %s198_s13  }
  0x19   :  { %190 = dma.done.wait [#allocation5], 256  }
  0x1a   :  { %191 = vsyncadd [#allocation5], 4294967040 }
  0x1b   :  { %192 = dma.done.wait [#allocation8], 256  }
  0x1c   :  { %193 = vsyncadd [#allocation8], 4294967040  ;;  %v66_v0 = vld [vmem:[#allocation4] sm:$0xff]  ;;  %v67_v1 = vld [vmem:[#allocation4 + $0x8] sm:$0xff]  ;;  %s200_s0 = smov [#allocation9]  }
  0x1d   :  { %v68_v2 = vld [vmem:[#allocation7] sm:$0xff]  ;;  %v69_v3 = vld [vmem:[#allocation7 + $0x8] sm:$0xff]  ;;  %s111_s1 = sshll.u32 %s200_s0, 4  ;;  %s112_s1 = int_to_ptr.vmem [resolvable:$true] %s111_s1 }
  0x1e   :  { %v70_v4 = vsub.f32 %v66_v0, %v68_v2  ;;  %v71_v5 = vsub.f32 %v67_v1, %v69_v3  ;;  %s170_s21 = scalar_lea.vmem %s112_s1, 16  ;;  %s174_s22 = scalar_lea.vmem %s112_s1, 32 }
  0x1f   :  { %p171_p10 = scmp.ne.s32.totalorder %s112_s1, %s170_s21  ;;  %p175_p11 = scmp.lt.s32.totalorder %s112_s1, %s112_s1 }
  0x20   :  { %v72_v6 = vmul.f32 %v70_v4, %v70_v4  ;;  %v74_v7 = vand.u32 2147483647, %v70_v4  ;;  %v73_v8 = vmul.f32 %v71_v5, %v71_v5  ;;  %v75_v9 = vand.u32 2147483647, %v71_v5  ;;  %p176_p12 = scmp.lt.s32.totalorder %s174_s22, %s170_s21 }
  0x22   :  { %v77_v10 = vadd.f32 %v73_v8, %v72_v6  ;;  %v81_v11 = vadd.f32 %v75_v9, %v74_v7  ;;  %p177_p13 = por %p176_p12, %p175_p11 }
  0x24   :  { %v88_v12 = vrot.slane %v77_v10, 4  ;;  %v95_v13 = vrot.slane %v81_v11, 4  ;;  %p178_p0 = pnand %p177_p13, %p171_p10 }
  0x26   :  { %v89_v14 = vadd.f32 %v88_v12, %v77_v10  ;;  %v96_v15 = vadd.f32 %v95_v13, %v81_v11 }
  0x28   :  { %v90_v16 = vrot.slane %v89_v14, 2  ;;  %v97_v17 = vrot.slane %v96_v15, 2 }
  0x2a   :  { %v91_v18 = vadd.f32 %v90_v16, %v89_v14  ;;  %v98_v19 = vadd.f32 %v97_v17, %v96_v15 }
  0x2c   :  { %v92_v20 = vrot.slane %v91_v18, 1  ;;  %v99_v21 = vrot.slane %v98_v19, 1 }
  0x2e   :  { %v93_v22 = vadd.f32 %v92_v20, %v91_v18  ;;  %v100_v23 = vadd.f32 %v99_v21, %v98_v19 }
  0x30   :  { %v101_v24 = vmul.f32 0.00016276042, %v93_v22  ;;  %v102_v25 = vmul.f32 0.00032552084, %v100_v23 }
  0x32   :  { %v103_v26 = vadd.f32 %v102_v25, %v101_v24 }
  0x34   :  { %104 = vst [vmem:[#allocation9] sm:$0x1] %v103_v26 }
  0x35   :  { %181 = shalt.err (!%p178_p0)
}
  0x36   :  { %114 = dma.vmem_to_hbm [thread:$0]  %s112_s1, 16, %s227_s2, [#allocation6]  }
  0x37   :  { %194 = dma.done.wait [#allocation6], 16  }
  0x38   :  { %195 = vsyncadd [#allocation6], 4294967280 }
  0x39   :  { %118 = vsyncpa [#allocation5], 1 }
  0x3a   :  { %119 = vsyncpa [#allocation8], 1 }
  0x3b   :  { %120 = vsyncpa [#allocation6], 1 }

</bundles_post_ra>
